<compile_context>
chip_gen: v6e
topology: v6e:2x2x1
jax: 0.10.0
libtpu: 0.0.40
codegen_flags: <defaults>
</compile_context>

<pallas_src>
import math

import jax
import jax.numpy as jnp
from jax.experimental import pallas as pl
from jax.experimental.pallas import tpu as pltpu


def _round_up(n: int, m: int) -> int:
    return (n + m - 1) // m * m


def _sublane_align(*dtypes) -> int:
    # Rows of a VMEM tile must respect sublane packing: 8 for 4-byte,
    # 16 for 2-byte, 32 for 1-byte element types.
    return max(8 * (4 // jnp.dtype(d).itemsize) for d in dtypes)


# --------------------------------------------------------------------------
# Kernel
# --------------------------------------------------------------------------
def decoder_kernel(z_ref, w3_ref, b3_ref, w4_ref, b4_ref, w5_ref, b5_ref, out_ref):
    cdt = w3_ref.dtype  # matmul operand dtype (bf16 or f32); accumulation is f32
    # fc3 + tanh (bias add + tanh in f32)
    h = jnp.tanh(
        jnp.dot(z_ref[...].astype(cdt), w3_ref[...],
                preferred_element_type=jnp.float32)
        + b3_ref[...]
    )
    # fc4 + tanh
    h = jnp.tanh(
        jnp.dot(h.astype(cdt), w4_ref[...],
                preferred_element_type=jnp.float32)
        + b4_ref[...]
    )
    # fc5 (no activation)
    out_ref[...] = (
        jnp.dot(h.astype(cdt), w5_ref[...],
                preferred_element_type=jnp.float32)
        + b5_ref[...]
    ).astype(out_ref.dtype)


# --------------------------------------------------------------------------
# One-time parameter preparation (hoisted out of the per-call forward)
# --------------------------------------------------------------------------
def prepare_decoder_params(params, *, compute_dtype=jnp.bfloat16):
    """Cast weights to the MXU operand dtype once; keep biases in f32.

    Call this once and reuse the result for every forward call -- this removes
    the per-call weight cast/pad HBM round trips.  bf16 weights halve weight
    DMA traffic and VMEM residency on all TPU generations (the MXU is
    bf16-native on v5e/v6e/v7x); accumulation stays f32 inside the kernel.
    # TODO(synk): a v7x fp8 weight path (per-channel scaling) could halve
    # weight VMEM again but is not a drop-in replacement.
    """
    return {
        "w3": params["w3"].astype(compute_dtype),
        "w4": params["w4"].astype(compute_dtype),
        "w5": params["w5"].astype(compute_dtype),
        "b3": params["b3"].reshape(1, -1).astype(jnp.float32),
        "b4": params["b4"].reshape(1, -1).astype(jnp.float32),
        "b5": params["b5"].reshape(1, -1).astype(jnp.float32),
    }


# --------------------------------------------------------------------------
# Forward wrapper
# --------------------------------------------------------------------------
def decoder_forward(z, prep, *, batch_tile=512, out_dtype=jnp.float32,
                    core_parallel=False):
    """z: (B, z_dim). prep: output of prepare_decoder_params().

    batch_tile: rows per grid step (512 is a good default on v5e/v6e; 256 on
    v7x if VMEM gets tight at very large h_dim/x_dim).
    core_parallel: set True on v7x (2 TensorCores/chip) to shard batch tiles
    across cores via pltpu.CORE_PARALLEL.
    """
    w3, b3 = prep["w3"], prep["b3"]
    w4, b4 = prep["w4"], prep["b4"]
    w5, b5 = prep["w5"], prep["b5"]

    B, z_dim = z.shape
    assert w3.shape[0] == z_dim, (w3.shape, z_dim)
    h_dim = w3.shape[1]
    x_dim = w5.shape[1]

    # --- batch tiling: minimal padding, partial trailing block allowed ------
    align = _sublane_align(z.dtype, out_dtype)
    Bq = _round_up(B, align)                     # pad at most (align-1) rows
    z_in = z if Bq == B else jnp.pad(z, ((0, Bq - B), (0, 0)))
    TB = min(_round_up(batch_tile, align), Bq)   # tile never exceeds the array
    grid = (pl.cdiv(Bq, TB),)                    # trailing partial block is OK

    # --- VMEM budget (v5e scoped default is only 16 MiB) --------------------
    itemsize = lambda a: int(jnp.dtype(a.dtype).itemsize)
    w_bytes = sum(int(a.size) * itemsize(a) for a in (w3, w4, w5, b3, b4, b5))
    tile_bytes = (TB * z_dim * itemsize(z)                     # z tile
                  + TB * x_dim * int(jnp.dtype(out_dtype).itemsize)  # out tile
                  + TB * h_dim * 4)                            # f32 intermediate
    # weights single-buffered (Buffered(1)); z/out tiles double-buffered; 2x slack
    footprint = w_bytes + 2 * tile_bytes
    vmem_limit = int(min(64 * 2 ** 20, max(32 * 2 ** 20, 2 * footprint)))

    # --- specs --------------------------------------------------------------
    def resident(shape):
        # Whole array, same block every grid step, single VMEM buffer
        # (weights never change, so no double-buffering needed).
        return pl.BlockSpec(shape, lambda i: (0, 0), pipeline_mode=pl.Buffered(1))

    in_specs = [
        pl.BlockSpec((TB, z_dim), lambda i: (i, 0)),
        resident((z_dim, h_dim)), resident((1, h_dim)),
        resident((h_dim, h_dim)), resident((1, h_dim)),
        resident((h_dim, x_dim)), resident((1, x_dim)),
    ]
    out_specs = pl.BlockSpec((TB, x_dim), lambda i: (i, 0))

    dim_sem = (pltpu.CORE_PARALLEL,) if core_parallel else ("parallel",)

    cost = pl.CostEstimate(
        flops=int(2 * Bq * (z_dim * h_dim + h_dim * h_dim + h_dim * x_dim)),
        transcendentals=int(2 * Bq * h_dim),
        bytes_accessed=int(Bq * z_dim * itemsize(z) + w_bytes
                           + Bq * x_dim * int(jnp.dtype(out_dtype).itemsize)),
    )

    out = pl.pallas_call(
        decoder_kernel,
        out_shape=jax.ShapeDtypeStruct((Bq, x_dim), out_dtype),
        grid=grid,
        in_specs=in_specs,
        out_specs=out_specs,
        compiler_params=pltpu.CompilerParams(
            dimension_semantics=dim_sem,
            vmem_limit_bytes=vmem_limit,
        ),
        cost_estimate=cost,
    )(z_in, w3, b3, w4, b4, w5, b5)

    return out if Bq == B else out[:B]


# --------------------------------------------------------------------------
# Init + pure-JAX reference
# --------------------------------------------------------------------------
def init_decoder_params(key, x_dim, z_dim, h_dim):
    """Deterministic init mimicking nn.Linear default (uniform +/- 1/sqrt(fan_in))."""
    ks = jax.random.split(key, 6)

    def lin(kw, kb, fan_in, fan_out):
        bound = 1.0 / math.sqrt(fan_in)
        w = jax.random.uniform(kw, (fan_in, fan_out), jnp.float32, -bound, bound)
        b = jax.random.uniform(kb, (1, fan_out), jnp.float32, -bound, bound)
        return w, b

    w3, b3 = lin(ks[0], ks[1], z_dim, h_dim)
    w4, b4 = lin(ks[2], ks[3], h_dim, h_dim)
    w5, b5 = lin(ks[4], ks[5], h_dim, x_dim)
    return {"w3": w3, "b3": b3, "w4": w4, "b4": b4, "w5": w5, "b5": b5}


def decoder_ref(z, params):
    h = jnp.tanh(z @ params["w3"] + params["b3"])
    h = jnp.tanh(h @ params["w4"] + params["b4"])
    return h @ params["w5"] + params["b5"]


if __name__ == "__main__":
    x_dim, z_dim, h_dim = 64, 8, 32
    key = jax.random.PRNGKey(0)
    k_params, k_z1, k_z2, k_z3 = jax.random.split(key, 4)
    params = init_decoder_params(k_params, x_dim, z_dim, h_dim)

    prep_f32 = prepare_decoder_params(params, compute_dtype=jnp.float32)
    prep_bf16 = prepare_decoder_params(params)  # default bf16 operands

    # 1) Small batch, single full block, f32 operands -- tight check.
    z_small = jax.random.normal(k_z1, (8, z_dim), jnp.float32)
    out_small = jax.block_until_ready(decoder_forward(z_small, prep_f32))
    ref_small = decoder_ref(z_small, params)
    assert out_small.shape == (8, x_dim), out_small.shape
    assert jnp.allclose(out_small, ref_small, atol=1e-5, rtol=1e-5), "f32 small mismatch"

    # 2) Multi-step grid with a partial trailing block (B=40, TB=16), f32.
    z_mid = jax.random.normal(k_z3, (40, z_dim), jnp.float32)
    out_mid = jax.block_until_ready(decoder_forward(z_mid, prep_f32, batch_tile=16))
    ref_mid = decoder_ref(z_mid, params)
    assert out_mid.shape == (40, x_dim), out_mid.shape
    assert jnp.allclose(out_mid, ref_mid, atol=1e-5, rtol=1e-5), "f32 mid mismatch"

    # 3) Non-sublane-aligned batch (300 -> pads only to 304), f32.
    z_big = jax.random.normal(k_z2, (300, z_dim), jnp.float32)
    out_big = jax.block_until_ready(decoder_forward(z_big, prep_f32))
    ref_big = decoder_ref(z_big, params)
    assert out_big.shape == (300, x_dim), out_big.shape
    assert jnp.allclose(out_big, ref_big, atol=1e-5, rtol=1e-5), "f32 big mismatch"

    # 4) bf16 matmul operands (default fast path), f32 accumulation -- loose check.
    out_bf16 = jax.block_until_ready(decoder_forward(z_big, prep_bf16))
    assert out_bf16.shape == (300, x_dim), out_bf16.shape
    assert jnp.allclose(out_bf16, ref_big, atol=5e-2, rtol=5e-2), "bf16 mismatch"

    print("KERNEL_OK")
</pallas_src>

<mosaic_0001>
module attributes {stable_mosaic.version = 11 : i64} {
  func.func @decoder_kernel(%arg0: i32, %arg1: memref<8x8xf32, #tpu.memory_space<vmem>>, %arg2: memref<8x32xf32, #tpu.memory_space<vmem>>, %arg3: memref<1x32xf32, #tpu.memory_space<vmem>>, %arg4: memref<32x32xf32, #tpu.memory_space<vmem>>, %arg5: memref<1x32xf32, #tpu.memory_space<vmem>>, %arg6: memref<32x64xf32, #tpu.memory_space<vmem>>, %arg7: memref<1x64xf32, #tpu.memory_space<vmem>>, %arg8: memref<8x64xf32, #tpu.memory_space<vmem>>) attributes {dimension_semantics = [#tpu.dimension_semantics<parallel>], iteration_bounds = array<i64: 1>, scalar_prefetch = 0 : i64, scratch_operands = 0 : i64, tpu.core_type = #tpu.core_type<tc>, window_params = [{transform_indices = @transform_0, window_bounds = array<i64: 8, 8>}, {pipeline_mode = #tpu.pipeline_mode<synchronous>, transform_indices = @transform_1, window_bounds = array<i64: 8, 32>}, {pipeline_mode = #tpu.pipeline_mode<synchronous>, transform_indices = @transform_2, window_bounds = array<i64: 1, 32>}, {pipeline_mode = #tpu.pipeline_mode<synchronous>, transform_indices = @transform_3, window_bounds = array<i64: 32, 32>}, {pipeline_mode = #tpu.pipeline_mode<synchronous>, transform_indices = @transform_4, window_bounds = array<i64: 1, 32>}, {pipeline_mode = #tpu.pipeline_mode<synchronous>, transform_indices = @transform_5, window_bounds = array<i64: 32, 64>}, {pipeline_mode = #tpu.pipeline_mode<synchronous>, transform_indices = @transform_6, window_bounds = array<i64: 1, 64>}, {transform_indices = @transform_7, window_bounds = array<i64: 8, 64>}]} {
    %c0 = arith.constant 0 : index
    %c0_0 = arith.constant 0 : index
    %0 = vector.load %arg1[%c0, %c0_0] : memref<8x8xf32, #tpu.memory_space<vmem>>, vector<8x8xf32>
    %c0_1 = arith.constant 0 : index
    %c0_2 = arith.constant 0 : index
    %1 = vector.load %arg2[%c0_1, %c0_2] : memref<8x32xf32, #tpu.memory_space<vmem>>, vector<8x32xf32>
    %cst = arith.constant dense<0.000000e+00> : vector<8x32xf32>
    %2 = tpu.matmul %0, %1, %cst {dimension_numbers = #tpu.dot_dimension_numbers<[1], [0], [0], [1], [0, 0, 1, 1], [], []>} : vector<8x8xf32>, vector<8x32xf32>, vector<8x32xf32> -> vector<8x32xf32>
    %c0_3 = arith.constant 0 : index
    %c0_4 = arith.constant 0 : index
    %3 = vector.load %arg3[%c0_3, %c0_4] : memref<1x32xf32, #tpu.memory_space<vmem>>, vector<1x32xf32>
    %4 = vector.broadcast %3 : vector<1x32xf32> to vector<8x32xf32>
    %5 = arith.addf %2, %4 : vector<8x32xf32>
    %6 = math.tanh %5 : vector<8x32xf32>
    %c0_5 = arith.constant 0 : index
    %c0_6 = arith.constant 0 : index
    %7 = vector.load %arg4[%c0_5, %c0_6] : memref<32x32xf32, #tpu.memory_space<vmem>>, vector<32x32xf32>
    %cst_7 = arith.constant dense<0.000000e+00> : vector<8x32xf32>
    %8 = tpu.matmul %6, %7, %cst_7 {dimension_numbers = #tpu.dot_dimension_numbers<[1], [0], [0], [1], [0, 0, 1, 1], [], []>} : vector<8x32xf32>, vector<32x32xf32>, vector<8x32xf32> -> vector<8x32xf32>
    %c0_8 = arith.constant 0 : index
    %c0_9 = arith.constant 0 : index
    %9 = vector.load %arg5[%c0_8, %c0_9] : memref<1x32xf32, #tpu.memory_space<vmem>>, vector<1x32xf32>
    %10 = vector.broadcast %9 : vector<1x32xf32> to vector<8x32xf32>
    %11 = arith.addf %8, %10 : vector<8x32xf32>
    %12 = math.tanh %11 : vector<8x32xf32>
    %c0_10 = arith.constant 0 : index
    %c0_11 = arith.constant 0 : index
    %13 = vector.load %arg6[%c0_10, %c0_11] : memref<32x64xf32, #tpu.memory_space<vmem>>, vector<32x64xf32>
    %cst_12 = arith.constant dense<0.000000e+00> : vector<8x64xf32>
    %14 = tpu.matmul %12, %13, %cst_12 {dimension_numbers = #tpu.dot_dimension_numbers<[1], [0], [0], [1], [0, 0, 1, 1], [], []>} : vector<8x32xf32>, vector<32x64xf32>, vector<8x64xf32> -> vector<8x64xf32>
    %c0_13 = arith.constant 0 : index
    %c0_14 = arith.constant 0 : index
    %15 = vector.load %arg7[%c0_13, %c0_14] : memref<1x64xf32, #tpu.memory_space<vmem>>, vector<1x64xf32>
    %16 = vector.broadcast %15 : vector<1x64xf32> to vector<8x64xf32>
    %17 = arith.addf %14, %16 : vector<8x64xf32>
    %c0_15 = arith.constant 0 : index
    %c0_16 = arith.constant 0 : index
    %18 = vector.load %arg8[%c0_15, %c0_16] : memref<8x64xf32, #tpu.memory_space<vmem>>, vector<8x64xf32>
    tpu.vector_store %arg8[%c0_15, %c0_16], %17 {strides = array<i32>} : memref<8x64xf32, #tpu.memory_space<vmem>>, vector<8x64xf32>,
    return
  }
  func.func @transform_0(%arg0: i32) -> (i32, i32) {
    %c0_i32 = arith.constant 0 : i32
    %c0_i32_0 = arith.constant 0 : i32
    return %arg0, %c0_i32 : i32, i32
  }
  func.func @transform_1(%arg0: i32) -> (i32, i32) {
    %c0_i32 = arith.constant 0 : i32
    %c0_i32_0 = arith.constant 0 : i32
    %c0_i32_1 = arith.constant 0 : i32
    return %c0_i32, %c0_i32_0 : i32, i32
  }
  func.func @transform_2(%arg0: i32) -> (i32, i32) {
    %c0_i32 = arith.constant 0 : i32
    %c0_i32_0 = arith.constant 0 : i32
    %c0_i32_1 = arith.constant 0 : i32
    return %c0_i32, %c0_i32_0 : i32, i32
  }
  func.func @transform_3(%arg0: i32) -> (i32, i32) {
    %c0_i32 = arith.constant 0 : i32
    %c0_i32_0 = arith.constant 0 : i32
    %c0_i32_1 = arith.constant 0 : i32
    return %c0_i32, %c0_i32_0 : i32, i32
  }
  func.func @transform_4(%arg0: i32) -> (i32, i32) {
    %c0_i32 = arith.constant 0 : i32
    %c0_i32_0 = arith.constant 0 : i32
    %c0_i32_1 = arith.constant 0 : i32
    return %c0_i32, %c0_i32_0 : i32, i32
  }
  func.func @transform_5(%arg0: i32) -> (i32, i32) {
    %c0_i32 = arith.constant 0 : i32
    %c0_i32_0 = arith.constant 0 : i32
    %c0_i32_1 = arith.constant 0 : i32
    return %c0_i32, %c0_i32_0 : i32, i32
  }
  func.func @transform_6(%arg0: i32) -> (i32, i32) {
    %c0_i32 = arith.constant 0 : i32
    %c0_i32_0 = arith.constant 0 : i32
    %c0_i32_1 = arith.constant 0 : i32
    return %c0_i32, %c0_i32_0 : i32, i32
  }
  func.func @transform_7(%arg0: i32) -> (i32, i32) {
    %c0_i32 = arith.constant 0 : i32
    %c0_i32_0 = arith.constant 0 : i32
    return %arg0, %c0_i32 : i32, i32
  }
}

</mosaic_0001>

<bundles_post_ra>
// kernel: tpu_custom_call.1
= control target key start
LH: loop header
LB: loop body
LE: loop exit
PB: predicated region body
PF: predicated region fallthrough
CT: control target
= control target key end

     0   :  { %12 = vsyncpa [#allocation3], 0  ;;  %s592_s0 = inlined_call_operand.hbm [shape: f32[8,8], index: 0, kind: input, shape index: {}]   ;;  %s593_s1 = inlined_call_operand.hbm [shape: f32[8,32], index: 1, kind: input, shape index: {}]   ;;  %s594_s2 = inlined_call_operand.vmem [shape: f32[1,32], index: 2, kind: input, shape index: {}]   ;;  %s595_s3 = inlined_call_operand.hbm [shape: f32[32,32], index: 3, kind: input, shape index: {}]   ;;  %s596_s4 = inlined_call_operand.vmem [shape: f32[1,32], index: 4, kind: input, shape index: {}]   ;;  %s597_s5 = inlined_call_operand.hbm [shape: f32[32,64], index: 5, kind: input, shape index: {}]   ;;  %s598_s6 = inlined_call_operand.vmem [shape: f32[1,64], index: 6, kind: input, shape index: {}]   ;;  %s599_s7 = inlined_call_operand.hbm [shape: f32[8,64], index: 7, kind: output, shape index: {}]  }
   0x1   :  { %13 = vsyncpa [#allocation6], 0 }
   0x2   :  { %14 = vsyncpa [#allocation9], 0 }
   0x3   :  { %15 = vsyncpa [#allocation4], 0  ;;  %s517_s24 = smov [#allocation5]   ;;  %s518_s26 = smov [#allocation2]  }
   0x4   :  { %s32_s25 = sshll.u32 %s517_s24, 4  ;;  %s22_s27 = sshll.u32 %s518_s26, 4  ;;  %s33_s25 = int_to_ptr.vmem [resolvable:$true] %s32_s25  ;;  %s23_s27 = int_to_ptr.vmem [resolvable:$true] %s22_s27 }
   0x5   :  { %s417_s28 = scalar_lea.vmem %s33_s25, 128  ;;  %p422_p1 = scmp.lt.s32.totalorder %s33_s25, %s33_s25 }
   0x6   :  { %p418_p0 = scmp.ne.s32.totalorder %s33_s25, %s417_s28  ;;  %p423_p2 = scmp.lt.s32.totalorder %s417_s28, %s417_s28 }
   0x8   :  { %p424_p3 = por %p423_p2, %p422_p1 }
   0xa   :  { %p425_p4 = pnand %p424_p3, %p418_p0 }
   0xc   :  { %428 = shalt.err (!%p425_p4)
}
   0xd   :  { %35 = dma.hbm_to_vmem [thread:$0]  %s593_s1, 128, %s33_s25, [#allocation6]  }
   0xe   :  { %s437_s8 = scalar_lea.vmem %s23_s27, 128  ;;  %p442_p6 = scmp.lt.s32.totalorder %s23_s27, %s23_s27 }
   0xf   :  { %p438_p5 = scmp.ne.s32.totalorder %s23_s27, %s437_s8  ;;  %p443_p7 = scmp.lt.s32.totalorder %s437_s8, %s437_s8 }
  0x11   :  { %p444_p8 = por %p443_p7, %p442_p6 }
  0x13   :  { %p445_p9 = pnand %p444_p8, %p438_p5 }
  0x15   :  { %448 = shalt.err (!%p445_p9)
}
  0x16   :  { %25 = dma.hbm_to_vmem [thread:$0]  %s592_s0, 128, %s23_s27, [#allocation3]  }
  0x17   :  { %s519_s11 = smov [#allocation7]  }
  0x18   :  { %s43_s12 = sshll.u32 %s519_s11, 4  ;;  %s44_s12 = int_to_ptr.vmem [resolvable:$true] %s43_s12 }
  0x19   :  { %s457_s13 = scalar_lea.vmem %s44_s12, 512  ;;  %p462_p11 = scmp.lt.s32.totalorder %s44_s12, %s44_s12 }
  0x1a   :  { %p458_p10 = scmp.ne.s32.totalorder %s44_s12, %s457_s13  ;;  %p463_p12 = scmp.lt.s32.totalorder %s457_s13, %s457_s13 }
  0x1c   :  { %p464_p13 = por %p463_p12, %p462_p11 }
  0x1e   :  { %p465_p0 = pnand %p464_p13, %p458_p10 }
  0x20   :  { %468 = shalt.err (!%p465_p0)
}
  0x21   :  { %s520_s1 = smov 128   ;;  %s521_s14 = smov 8  }
  0x22   :  { %49 = dma.hbm_to_vmem [thread:$0]  %s595_s3, 512, %s44_s12, [#allocation6], %s520_s1, %s520_s1, %s521_s14  }
  0x23   :  { %s522_s17 = smov [#allocation8]  }
  0x24   :  { %s57_s18 = sshll.u32 %s522_s17, 4  ;;  %s58_s18 = int_to_ptr.vmem [resolvable:$true] %s57_s18 }
  0x25   :  { %s477_s0 = scalar_lea.vmem %s58_s18, 512  ;;  %p482_p2 = scmp.lt.s32.totalorder %s58_s18, %s58_s18 }
  0x26   :  { %p478_p1 = scmp.ne.s32.totalorder %s58_s18, %s477_s0  ;;  %p483_p3 = scmp.lt.s32.totalorder %s477_s0, %s477_s0 }
  0x28   :  { %p484_p4 = por %p483_p3, %p482_p2 }
  0x2a   :  { %p485_p5 = pnand %p484_p4, %p478_p1 }
  0x2c   :  { %488 = shalt.err (!%p485_p5)
}
  0x2d   :  { %63 = dma.hbm_to_vmem [thread:$0]  %s597_s5, 512, %s58_s18, [#allocation9], %s520_s1, %s520_s1, %s521_s14  }
  0x2e   :  { %509 = dma.done.wait [#allocation3], 128  }
  0x2f   :  { %510 = vsyncadd [#allocation3], 4294967168 }
  0x30   :  { %511 = dma.done.wait [#allocation6], 640  }
  0x31   :  { %512 = vsyncadd [#allocation6], 4294966656 }
  0x32   :  { %513 = dma.done.wait [#allocation9], 512  }
  0x33   :  { %514 = vsyncadd [#allocation9], 4294966784  ;;  %v523_v0 = vmov 0.0   ;;  %vm524_vm0 = vmmov 0   ;;  %vm87_vm1 = vcmask 64512   ;;  %v79_v1 = vld [vmem:[#allocation5] sm:$0xff] }
  0x34   :  { %369 = vmatprep.subr.mxu0 %v523_v0  ;;  %371 = vmatprep.mubr.msk.f32.mxu0 %vm524_vm0, %v523_v0  ;;  %v78_v2 = vld [vmem:[#allocation2] sm:$0xff]  ;;  %v165_v3 = vld [vmem:[#allocation7 + $0x18] sm:$0xff]  ;;  %v163_v5 = vld [vmem:[#allocation7 + $0x8] sm:$0xff]  ;;  %vm173_vm2 = vcmask 261120   ;;  %s525_s24 = smov [#allocation10]   ;;  %vm332_vm3 = vcmask 523264  }
  0x35   :  { %374 = vmatprep.subr.mxu1 %v523_v0  ;;  %382 = vmatprep.mubr.msk.f32.mxu1 %vm524_vm0, %v523_v0  ;;  %v164_v4 = vld [vmem:[#allocation7 + $0x10] sm:$0xff]  ;;  %v162_v6 = vld [vmem:[#allocation7] sm:$0xff]  ;;  %v251_v12 = vld [vmem:[#allocation8 + $0x18] sm:$0xff]  ;;  %s340_s25 = sshll.u32 %s525_s24, 4  ;;  %s341_s25 = int_to_ptr.vmem [resolvable:$true] %s340_s25 }
  0x36   :  { %370 = vmatpush3.msra.mxu0 %v79_v1  ;;  %375 = vmatpush3.msra.mxu1 %v165_v3  ;;  %v351_v7 = vld [vmem:[%s594_s2] ss:$0 sm:$0xff]  ;;  %v249_v14 = vld [vmem:[#allocation8 + $0x8] sm:$0xff]  ;;  %v248_v15 = vld [vmem:[#allocation8] sm:$0xff]  ;;  %p494_p7 = scmp.lt.s32.totalorder %s341_s25, %s341_s25 }
  0x37   :  { %372 = vmatmul.mubr.msk.f32.vlgmr.msra.gmra.mxu0 %vm87_vm1, %v78_v2  ;;  %385 = vmatprep.subr.mxu0 %v523_v0  ;;  %v250_v13 = vld [vmem:[#allocation8 + $0x10] sm:$0xff] }
  0x38   :  { %393 = vmatprep.mubr.msk.f32.mxu0 %vm524_vm0, %v523_v0  ;;  %376 = vmatprep.subr.mxu1 %v523_v0  ;;  %v353_v16 = vld [vmem:[%s596_s4] ss:$0 sm:$0xff]  ;;  %s489_s4 = scalar_lea.vmem %s341_s25, 128 }
  0x39   :  { %377 = vmatpush3.msra.mxu1 %v164_v4  ;;  %386 = vmatpush3.msra.mxu0 %v251_v12  ;;  %v355_v21 = vld [vmem:[%s598_s6] ss:$0 sm:$0xff]  ;;  %p490_p6 = scmp.ne.s32.totalorder %s341_s25, %s489_s4  ;;  %p495_p8 = scmp.lt.s32.totalorder %s489_s4, %s489_s4 }
  0x3a   :  { %378 = vmatprep.subr.mxu1 %v523_v0  ;;  %387 = vmatprep.subr.mxu0 %v523_v0 }
  0x3b   :  { %379 = vmatpush3.msra.mxu1 %v163_v5  ;;  %388 = vmatpush3.msra.mxu0 %v250_v13  ;;  %p496_p9 = por %p495_p8, %p494_p7 }
  0x3c   :  { %380 = vmatprep.subr.mxu1 %v523_v0  ;;  %389 = vmatprep.subr.mxu0 %v523_v0 }
  0x3d   :  { %381 = vmatpush3.msra.mxu1 %v162_v6  ;;  %390 = vmatpush3.msra.mxu0 %v249_v14  ;;  %p497_p10 = pnand %p496_p9, %p490_p6 }
  0x3e   :  { %391 = vmatprep.subr.mxu0 %v523_v0 }
  0x3f   :  { %392 = vmatpush3.msra.mxu0 %v248_v15 }
  0xf7   :  { %v157_v8 = vpop.f32.mrf.mxu0 }
  0xf8   :  { %v158_v9 = vadd.f32 %v351_v7, %v157_v8 }
  0xf9   :  { %v373_v10 = vpop.f32.mrf.mxu0 }
  0xfa   :  { %405 = vtanh.f32 %v158_v9 }
 0x107   :  { %v406_v11 = vpop.eup %405 }
 0x108   :  { %383 = vmatmul.mubr.msk.f32.vlgmr.msra.gmra.mxu1 %vm173_vm2, %v406_v11 }
 0x1c8   :  { %v243_v17 = vpop.f32.mrf.mxu1 }
 0x1c9   :  { %v244_v18 = vadd.f32 %v353_v16, %v243_v17 }
 0x1ca   :  { %v384_v19 = vpop.f32.mrf.mxu1 }
 0x1cb   :  { %407 = vtanh.f32 %v244_v18 }
 0x1d8   :  { %v408_v20 = vpop.eup %407 }
 0x1d9   :  { %394 = vmatmul.mubr.msk.f32.vlgmr.msra.gmra.mxu0 %vm173_vm2, %v408_v20 }
 0x299   :  { %v328_v22 = vpop.f32.mrf.mxu0 }
 0x29a   :  { %v329_v23 = vadd.f32 %v355_v21, %v328_v22 }
 0x29b   :  { %v395_v24 = vpop.f32.mrf.mxu0 }
 0x29c   :  { %333 = vst.msk [vmem:[#allocation10] sm:$0xff] %vm332_vm3, %v329_v23 }
 0x29d   :  { %500 = shalt.err (!%p497_p10)
}
 0x29e   :  { %343 = dma.vmem_to_hbm [thread:$0]  %s341_s25, 128, %s599_s7, [#allocation4]  }
 0x29f   :  { %515 = dma.done.wait [#allocation4], 128  }
 0x2a0   :  { %516 = vsyncadd [#allocation4], 4294967168 }
 0x2a1   :  { %347 = vsyncpa [#allocation3], 1 }
 0x2a2   :  { %348 = vsyncpa [#allocation6], 1 }
 0x2a3   :  { %349 = vsyncpa [#allocation9], 1 }
 0x2a4   :  { %350 = vsyncpa [#allocation4], 1 }

</bundles_post_ra>
